<compile_context>
chip_gen: v5e
topology: v5e:2x2
jax: 0.10.0
libtpu: 0.0.40
codegen_flags: <defaults>
</compile_context>

<pallas_src>
import functools

import jax
import jax.numpy as jnp
from jax.experimental import pallas as pl
from jax.experimental.pallas import tpu as pltpu


LANE = 128
SUBLANE = 8
TARGET_BLOCK_BYTES = 2 * 1024 * 1024   # ~2 MiB f32 per input block
VMEM_LIMIT_BYTES = 32 * 1024 * 1024    # safe on v5e/v6e (128 MiB) and v7x (64 MiB) physical VMEM
NEG_FILL = -1e9                        # sigmoid(-1e9) == 0.0 -> padded logits contribute nothing
MAX_PAR = 2                            # v7x has 2 TensorCores; harmless elsewhere


def _cdiv(a, b):
    return -(-a // b)


def _round_up(a, b):
    return _cdiv(a, b) * b


def _soft_dice_kernel(x_ref, y_ref, numer_ref, denor_ref, num_acc, den_acc, *, p):
    j = pl.program_id(1)

    @pl.when(j == 0)
    def _():
        num_acc[...] = jnp.zeros_like(num_acc)
        den_acc[...] = jnp.zeros_like(den_acc)

    # Cast per-tile in VMEM (hidden under the DMA for this mem-bound kernel); compute in f32.
    x = x_ref[...].astype(jnp.float32)
    y = y_ref[...].astype(jnp.float32)

    probs = jax.nn.sigmoid(x)          # EUP
    prod = probs * y                   # VPU
    if p == 1:
        den = probs + y
    elif p == 2:
        den = probs * probs + y * y
    else:
        den = probs ** p + y ** p

    # Reduce the sublane/row axis only (VPU vreg adds + one sublane reduce per lane group),
    # accumulate into lane-wide (1, width) scratch; defer the cross-lane reduce to the end.
    num_acc[...] += jnp.sum(prod, axis=0, keepdims=True)
    den_acc[...] += jnp.sum(den, axis=0, keepdims=True)

    @pl.when(j == pl.num_programs(1) - 1)
    def _():
        numer_ref[...] = jnp.sum(num_acc[...], axis=1, keepdims=True)
        denor_ref[...] = jnp.sum(den_acc[...], axis=1, keepdims=True)


def soft_dice_loss_v1(logits, labels, p=1, smooth=1.0):
    """Forward pass of SoftDiceLossV1. Accepts any (matching) shapes; returns a scalar."""
    if not jnp.issubdtype(logits.dtype, jnp.floating):
        logits = logits.astype(jnp.float32)
    if not jnp.issubdtype(labels.dtype, jnp.floating):
        labels = labels.astype(jnp.float32)

    x = logits.reshape(-1)
    y = labels.reshape(-1)
    n = x.shape[0]

    # Wide, lane-dense slab width (multiple of 128) sized to the input.
    width = LANE
    for w in (4096, 2048, 1024, 512, 256):
        if n >= SUBLANE * w:
            width = w
            break

    rows = _cdiv(n, width)

    # ~2 MiB (f32) row-blocks.
    target_rows = _round_up(max(SUBLANE, TARGET_BLOCK_BYTES // (4 * width)), SUBLANE)
    num_tiles = _cdiv(rows, target_rows)

    # Leading parallel axis (megacore sharding on multi-TC chips), inner reduction axis.
    npar = MAX_PAR if num_tiles >= MAX_PAR else 1
    g = _cdiv(num_tiles, npar)
    tile_rows = _round_up(_cdiv(rows, npar * g), SUBLANE)
    rows_padded = npar * g * tile_rows
    total = rows_padded * width

    if total != n:
        pad = total - n
        # Padded logits -> sigmoid == 0; padded labels == 0 -> zero contribution to both sums.
        x = jnp.pad(x, (0, pad), constant_values=NEG_FILL)
        y = jnp.pad(y, (0, pad), constant_values=0)
    x2d = x.reshape(rows_padded, width)
    y2d = y.reshape(rows_padded, width)

    kernel = functools.partial(_soft_dice_kernel, p=p)
    numer, denor = pl.pallas_call(
        kernel,
        out_shape=(
            jax.ShapeDtypeStruct((npar, 1), jnp.float32),
            jax.ShapeDtypeStruct((npar, 1), jnp.float32),
        ),
        grid_spec=pltpu.PrefetchScalarGridSpec(
            num_scalar_prefetch=0,
            grid=(npar, g),
            in_specs=[
                pl.BlockSpec((tile_rows, width), lambda i, j: (i * g + j, 0)),
                pl.BlockSpec((tile_rows, width), lambda i, j: (i * g + j, 0)),
            ],
            out_specs=[
                pl.BlockSpec((1, 1), lambda i, j: (i, 0)),
                pl.BlockSpec((1, 1), lambda i, j: (i, 0)),
            ],
            scratch_shapes=[
                pltpu.VMEM((1, width), jnp.float32),
                pltpu.VMEM((1, width), jnp.float32),
            ],
        ),
        compiler_params=pltpu.CompilerParams(
            # i: independent slices (megacore-shardable); j: reduction into resident scratch.
            dimension_semantics=("parallel", "arbitrary"),
            vmem_limit_bytes=VMEM_LIMIT_BYTES,
        ),
    )(x2d, y2d)

    numer_s = jnp.sum(numer)
    denor_s = jnp.sum(denor)
    return 1.0 - (2.0 * numer_s + smooth) / (denor_s + smooth)


if __name__ == "__main__":
    key = jax.random.PRNGKey(0)
    k1, k2 = jax.random.split(key)
    # (N, C, H, W) logits and matching (soft) binary labels
    logits = jax.random.normal(k1, (2, 4, 16, 16), dtype=jnp.float32) * 2.0
    labels = (jax.random.uniform(k2, (2, 4, 16, 16)) > 0.5).astype(jnp.float32)

    loss = jax.block_until_ready(soft_dice_loss_v1(logits, labels, p=1, smooth=1.0))

    # reference (plain JAX)
    probs = jax.nn.sigmoid(logits)
    numer = jnp.sum(probs * labels)
    denor = jnp.sum(probs + labels)
    ref = 1.0 - (2.0 * numer + 1.0) / (denor + 1.0)

    assert loss.shape == ()
    assert jnp.abs(loss - ref) < 1e-4, (loss, ref)
    print("KERNEL_OK")
</pallas_src>

<mosaic_0001>
module attributes {stable_mosaic.version = 11 : i64} {
  func.func @_soft_dice_kernel(%arg0: i32, %arg1: i32, %arg2: memref<8x256xf32, #tpu.memory_space<vmem>>, %arg3: memref<8x256xf32, #tpu.memory_space<vmem>>, %arg4: memref<1x1xf32, #tpu.memory_space<vmem>>, %arg5: memref<1x1xf32, #tpu.memory_space<vmem>>, %arg6: memref<1x256xf32, #tpu.memory_space<vmem>>, %arg7: memref<1x256xf32, #tpu.memory_space<vmem>>) attributes {dimension_semantics = [#tpu.dimension_semantics<parallel>, #tpu.dimension_semantics<arbitrary>], iteration_bounds = array<i64: 1, 1>, scalar_prefetch = 0 : i64, scratch_operands = 2 : i64, tpu.core_type = #tpu.core_type<tc>, window_params = [{transform_indices = @transform_0, window_bounds = array<i64: 8, 256>}, {transform_indices = @transform_1, window_bounds = array<i64: 8, 256>}, {transform_indices = @transform_2, window_bounds = array<i64: 1, 1>}, {transform_indices = @transform_3, window_bounds = array<i64: 1, 1>}]} {
    %c0_i32 = arith.constant 0 : i32
    %0 = arith.cmpi eq, %arg1, %c0_i32 : i32
    %1 = arith.extui %0 : i1 to i32
    %c0_i32_0 = arith.constant 0 : i32
    %2 = arith.cmpi ne, %1, %c0_i32_0 : i32
    scf.if %2 {
      %cst_16 = arith.constant 0.000000e+00 : f32
      %25 = vector.broadcast %cst_16 : f32 to vector<1x256xf32>
      %c0_17 = arith.constant 0 : index
      %c0_18 = arith.constant 0 : index
      %26 = vector.load %arg6[%c0_17, %c0_18] : memref<1x256xf32, #tpu.memory_space<vmem>>, vector<1x256xf32>
      tpu.vector_store %arg6[%c0_17, %c0_18], %25 {strides = array<i32>} : memref<1x256xf32, #tpu.memory_space<vmem>>, vector<1x256xf32>,
      %cst_19 = arith.constant 0.000000e+00 : f32
      %27 = vector.broadcast %cst_19 : f32 to vector<1x256xf32>
      %c0_20 = arith.constant 0 : index
      %c0_21 = arith.constant 0 : index
      %28 = vector.load %arg7[%c0_20, %c0_21] : memref<1x256xf32, #tpu.memory_space<vmem>>, vector<1x256xf32>
      tpu.vector_store %arg7[%c0_20, %c0_21], %27 {strides = array<i32>} : memref<1x256xf32, #tpu.memory_space<vmem>>, vector<1x256xf32>,
    } else {
    }
    %c0 = arith.constant 0 : index
    %c0_1 = arith.constant 0 : index
    %3 = vector.load %arg2[%c0, %c0_1] : memref<8x256xf32, #tpu.memory_space<vmem>>, vector<8x256xf32>
    %c0_2 = arith.constant 0 : index
    %c0_3 = arith.constant 0 : index
    %4 = vector.load %arg3[%c0_2, %c0_3] : memref<8x256xf32, #tpu.memory_space<vmem>>, vector<8x256xf32>
    %5 = arith.negf %3 : vector<8x256xf32>
    %6 = math.exp %5 : vector<8x256xf32>
    %cst = arith.constant 1.000000e+00 : f32
    %7 = vector.broadcast %cst : f32 to vector<8x256xf32>
    %8 = arith.addf %7, %6 : vector<8x256xf32>
    %9 = arith.divf %7, %8 : vector<8x256xf32>
    %10 = arith.mulf %9, %4 : vector<8x256xf32>
    %11 = arith.addf %9, %4 : vector<8x256xf32>
    %c0_4 = arith.constant 0 : index
    %c0_5 = arith.constant 0 : index
    %12 = vector.load %arg6[%c0_4, %c0_5] : memref<1x256xf32, #tpu.memory_space<vmem>>, vector<1x256xf32>
    %cst_6 = arith.constant dense<0.000000e+00> : vector<256xf32>
    %13 = vector.multi_reduction <add>, %10, %cst_6 [0] : vector<8x256xf32> to vector<256xf32>
    %14 = vector.shape_cast %13 : vector<256xf32> to vector<1x256xf32>
    %15 = arith.addf %12, %14 : vector<1x256xf32>
    %c0_7 = arith.constant 0 : index
    %c0_8 = arith.constant 0 : index
    %16 = vector.load %arg6[%c0_7, %c0_8] : memref<1x256xf32, #tpu.memory_space<vmem>>, vector<1x256xf32>
    tpu.vector_store %arg6[%c0_7, %c0_8], %15 {strides = array<i32>} : memref<1x256xf32, #tpu.memory_space<vmem>>, vector<1x256xf32>,
    %c0_9 = arith.constant 0 : index
    %c0_10 = arith.constant 0 : index
    %17 = vector.load %arg7[%c0_9, %c0_10] : memref<1x256xf32, #tpu.memory_space<vmem>>, vector<1x256xf32>
    %cst_11 = arith.constant dense<0.000000e+00> : vector<256xf32>
    %18 = vector.multi_reduction <add>, %11, %cst_11 [0] : vector<8x256xf32> to vector<256xf32>
    %19 = vector.shape_cast %18 : vector<256xf32> to vector<1x256xf32>
    %20 = arith.addf %17, %19 : vector<1x256xf32>
    %c0_12 = arith.constant 0 : index
    %c0_13 = arith.constant 0 : index
    %21 = vector.load %arg7[%c0_12, %c0_13] : memref<1x256xf32, #tpu.memory_space<vmem>>, vector<1x256xf32>
    tpu.vector_store %arg7[%c0_12, %c0_13], %20 {strides = array<i32>} : memref<1x256xf32, #tpu.memory_space<vmem>>, vector<1x256xf32>,
    %c0_i32_14 = arith.constant 0 : i32
    %22 = arith.cmpi eq, %arg1, %c0_i32_14 : i32
    %23 = arith.extui %22 : i1 to i32
    %c0_i32_15 = arith.constant 0 : i32
    %24 = arith.cmpi ne, %23, %c0_i32_15 : i32
    scf.if %24 {
      %c0_16 = arith.constant 0 : index
      %c0_17 = arith.constant 0 : index
      %25 = vector.load %arg6[%c0_16, %c0_17] : memref<1x256xf32, #tpu.memory_space<vmem>>, vector<1x256xf32>
      %cst_18 = arith.constant dense<0.000000e+00> : vector<1xf32>
      %26 = vector.multi_reduction <add>, %25, %cst_18 [1] : vector<1x256xf32> to vector<1xf32>
      %27 = vector.shape_cast %26 : vector<1xf32> to vector<1x1xf32>
      %c0_19 = arith.constant 0 : index
      %c0_20 = arith.constant 0 : index
      %28 = vector.load %arg4[%c0_19, %c0_20] : memref<1x1xf32, #tpu.memory_space<vmem>>, vector<1x1xf32>
      tpu.vector_store %arg4[%c0_19, %c0_20], %27 {strides = array<i32>} : memref<1x1xf32, #tpu.memory_space<vmem>>, vector<1x1xf32>,
      %c0_21 = arith.constant 0 : index
      %c0_22 = arith.constant 0 : index
      %29 = vector.load %arg7[%c0_21, %c0_22] : memref<1x256xf32, #tpu.memory_space<vmem>>, vector<1x256xf32>
      %cst_23 = arith.constant dense<0.000000e+00> : vector<1xf32>
      %30 = vector.multi_reduction <add>, %29, %cst_23 [1] : vector<1x256xf32> to vector<1xf32>
      %31 = vector.shape_cast %30 : vector<1xf32> to vector<1x1xf32>
      %c0_24 = arith.constant 0 : index
      %c0_25 = arith.constant 0 : index
      %32 = vector.load %arg5[%c0_24, %c0_25] : memref<1x1xf32, #tpu.memory_space<vmem>>, vector<1x1xf32>
      tpu.vector_store %arg5[%c0_24, %c0_25], %31 {strides = array<i32>} : memref<1x1xf32, #tpu.memory_space<vmem>>, vector<1x1xf32>,
    } else {
    }
    return
  }
  func.func @transform_0(%arg0: i32, %arg1: i32) -> (i32, i32) {
    %c1_i32 = arith.constant 1 : i32
    %0 = arith.muli %arg0, %c1_i32 : i32
    %1 = arith.addi %0, %arg1 : i32
    %c0_i32 = arith.constant 0 : i32
    %c0_i32_0 = arith.constant 0 : i32
    return %1, %c0_i32 : i32, i32
  }
  func.func @transform_1(%arg0: i32, %arg1: i32) -> (i32, i32) {
    %c1_i32 = arith.constant 1 : i32
    %0 = arith.muli %arg0, %c1_i32 : i32
    %1 = arith.addi %0, %arg1 : i32
    %c0_i32 = arith.constant 0 : i32
    %c0_i32_0 = arith.constant 0 : i32
    return %1, %c0_i32 : i32, i32
  }
  func.func @transform_2(%arg0: i32, %arg1: i32) -> (i32, i32) {
    %c0_i32 = arith.constant 0 : i32
    %c0_i32_0 = arith.constant 0 : i32
    return %arg0, %c0_i32 : i32, i32
  }
  func.func @transform_3(%arg0: i32, %arg1: i32) -> (i32, i32) {
    %c0_i32 = arith.constant 0 : i32
    %c0_i32_0 = arith.constant 0 : i32
    return %arg0, %c0_i32 : i32, i32
  }
}

</mosaic_0001>

<bundles_post_ra>
// kernel: tpu_custom_call.1
= control target key start
LH: loop header
LB: loop body
LE: loop exit
PB: predicated region body
PF: predicated region fallthrough
CT: control target
= control target key end

     0   :  { %9 = vsyncpa [#allocation5], 0  ;;  %s390_s0 = inlined_call_operand.hbm [shape: f32[8,256], index: 0, kind: input, shape index: {}]   ;;  %s391_s1 = inlined_call_operand.hbm [shape: f32[8,256], index: 1, kind: input, shape index: {}]   ;;  %s392_s2 = inlined_call_operand.hbm [shape: f32[1,1], index: 2, kind: output, shape index: {0}]   ;;  %s393_s3 = inlined_call_operand.hbm [shape: f32[1,1], index: 3, kind: output, shape index: {1}]  }
   0x1   :  { %10 = vsyncpa [#allocation8], 0 }
   0x2   :  { %11 = vsyncpa [#allocation6], 0 }
   0x3   :  { %12 = vsyncpa [#allocation11], 0  ;;  %s22_s14 = sshll.u32 %s390_s0, 4  ;;  %s335_s15 = smov [#allocation4]   ;;  %s23_s14 = int_to_ptr.hbm [resolvable:$true] %s22_s14 }
   0x4   :  { %s24_s16 = sshll.u32 %s335_s15, 4  ;;  %s37_s19 = sshll.u32 %s391_s1, 4  ;;  %s25_s16 = int_to_ptr.vmem [resolvable:$true] %s24_s16  ;;  %s38_s19 = int_to_ptr.hbm [resolvable:$true] %s37_s19 }
   0x5   :  { %27 = dma.hbm_to_vmem [thread:$0]  %s23_s14, 256, %s25_s16, [#allocation5]  }
   0x6   :  { %s336_s20 = smov [#allocation7]  }
   0x7   :  { %s39_s21 = sshll.u32 %s336_s20, 4  ;;  %s40_s21 = int_to_ptr.vmem [resolvable:$true] %s39_s21 }
   0x8   :  { %42 = dma.hbm_to_vmem [thread:$0]  %s38_s19, 256, %s40_s21, [#allocation8]  }
   0x9   :  { %327 = dma.done.wait [#allocation5], 256  }
   0xa   :  { %328 = vsyncadd [#allocation5], 4294967040 }
   0xb   :  { %329 = dma.done.wait [#allocation8], 256  }
   0xc   :  { %330 = vsyncadd [#allocation8], 4294967040  ;;  %v57_v0 = vlaneseq  ;;  %v337_v2 = vmov 0.0   ;;  %v63_v3 = vld [vmem:[#allocation4] sm:$0xff]  ;;  %v64_v4 = vld [vmem:[#allocation4 + $0x8] sm:$0xff]  ;;  %vm125_vm9 = vcmask 1040384  }
   0xd   :  { %v216_v5 = vmul.f32 -1.442695, %v63_v3  ;;  %v217_v6 = vmul.f32 -1.442695, %v64_v4  ;;  %v65_v26 = vld [vmem:[#allocation7] sm:$0xff]  ;;  %v66_v28 = vld [vmem:[#allocation7 + $0x8] sm:$0xff] }
   0xe   :  { %vm366_vm0 = vcmp.lt.s32.totalorder %v57_v0, 256  ;;  %s338_s0 = smov [#allocation9]   ;;  %s189_s24 = sshll.u32 %s392_s2, 4  ;;  %vm168_vm10 = vcmask 0   ;;  %s190_s24 = int_to_ptr.hbm [resolvable:$true] %s189_s24 }
   0xf   :  { %61 = vst.msk [vmem:[#allocation2] sm:$0x3] %vm366_vm0, %v337_v2  ;;  %223 = vpow2.f32 %v216_v5  ;;  %s187_s1 = sshll.u32 %s338_s0, 4  ;;  %s339_s25 = smov [#allocation10]   ;;  %s188_s1 = int_to_ptr.vmem [resolvable:$true] %s187_s1 }
  0x10   :  { %62 = vst.msk [vmem:[#allocation3] sm:$0x3] %vm366_vm0, %v337_v2  ;;  %225 = vpow2.f32 %v217_v6  ;;  %s198_s26 = sshll.u32 %s339_s25, 4  ;;  %s200_s29 = sshll.u32 %s393_s3, 4  ;;  %s199_s26 = int_to_ptr.vmem [resolvable:$true] %s198_s26  ;;  %s201_s29 = int_to_ptr.hbm [resolvable:$true] %s200_s29 }
  0x15   :  { %v224_v7 = vpop.eup %223 }
  0x16   :  { %v226_v8 = vpop.eup %225  ;;  %v73_v9 = vadd.f32 1.0, %v224_v7  ;;  %v109_v61 = vld [vmem:[#allocation2] sm:$0x3] }
  0x17   :  { %v74_v10 = vadd.f32 1.0, %v226_v8  ;;  %v134_v63 = vld [vmem:[#allocation3] sm:$0x3] }
  0x18   :  { %227 = vrcp.f32 %v73_v9  ;;  %vm80_vm1 = vweird.f32 %v73_v9  ;;  %v86_v14 = vand.u32 2147483648, %v73_v9  ;;  %v84_v17 = vand.u32 2147483647, %v73_v9 }
  0x19   :  { %229 = vrcp.f32 %v74_v10  ;;  %v101_v18 = vand.u32 2147483648, %v74_v10  ;;  %vm95_vm3 = vweird.f32 %v74_v10  ;;  %v99_v20 = vand.u32 2147483647, %v74_v10 }
  0x1a   :  { %v87_v22 = vor.u32 1.1754944e-38, %v86_v14  ;;  %vm85_vm6 = vcmp.eq.f32.partialorder %v84_v17, 8.507059e+37 }
  0x1b   :  { %v102_v25 = vor.u32 1.1754944e-38, %v101_v18  ;;  %vm100_vm8 = vcmp.eq.f32.partialorder %v99_v20, 8.507059e+37 }
  0x1e   :  { %v228_v11 = vpop.eup %227 }
  0x1f   :  { %v230_v12 = vpop.eup %229  ;;  %v76_v13 = vmul.f32 %v228_v11, %v73_v9  ;;  %vm81_vm2 = vweird.f32 %v228_v11 }
  0x20   :  { %v91_v15 = vmul.f32 %v230_v12, %v74_v10  ;;  %vm96_vm4 = vweird.f32 %v230_v12  ;;  %vm82_vm5 = vmor %vm80_vm1, %vm81_vm2 }
  0x21   :  { %v77_v16 = vsub.f32 1.0, %v76_v13  ;;  %vm97_vm7 = vmor %vm95_vm3, %vm96_vm4 }
  0x22   :  { %v92_v19 = vsub.f32 1.0, %v91_v15 }
  0x23   :  { %v78_v21 = vmul.f32 %v228_v11, %v77_v16 }
  0x24   :  { %v93_v23 = vmul.f32 %v230_v12, %v92_v19 }
  0x25   :  { %v79_v24 = vadd.f32 %v228_v11, %v78_v21 }
  0x26   :  { %v94_v27 = vadd.f32 %v230_v12, %v93_v23 }
  0x27   :  { %v83_v29 = vsel %vm82_vm5, %v228_v11, %v79_v24 }
  0x28   :  { %v88_v30 = vsel %vm85_vm6, %v87_v22, %v83_v29  ;;  %v98_v31 = vsel %vm97_vm7, %v230_v12, %v94_v27 }
  0x29   :  { %v103_v32 = vsel %vm100_vm8, %v102_v25, %v98_v31  ;;  %v105_v33 = vmul.f32 %v88_v30, %v65_v26  ;;  %v107_v34 = vadd.f32 %v88_v30, %v65_v26 }
  0x2a   :  { %v106_v35 = vmul.f32 %v103_v32, %v66_v28  ;;  %v108_v36 = vadd.f32 %v103_v32, %v66_v28 }
  0x2b   :  { %v110_v37 = vrot.slane %v105_v33, 4  ;;  %v135_v38 = vrot.slane %v107_v34, 4 }
  0x2c   :  { %v116_v39 = vrot.slane %v106_v35, 4  ;;  %v141_v40 = vrot.slane %v108_v36, 4 }
  0x2d   :  { %v111_v41 = vadd.f32 %v110_v37, %v105_v33  ;;  %v136_v42 = vadd.f32 %v135_v38, %v107_v34 }
  0x2e   :  { %v117_v43 = vadd.f32 %v116_v39, %v106_v35  ;;  %v142_v44 = vadd.f32 %v141_v40, %v108_v36 }
  0x2f   :  { %v112_v45 = vrot.slane %v111_v41, 2  ;;  %v137_v46 = vrot.slane %v136_v42, 2 }
  0x30   :  { %v118_v47 = vrot.slane %v117_v43, 2  ;;  %v143_v48 = vrot.slane %v142_v44, 2 }
  0x31   :  { %v113_v49 = vadd.f32 %v112_v45, %v111_v41  ;;  %v138_v50 = vadd.f32 %v137_v46, %v136_v42 }
  0x32   :  { %v119_v51 = vadd.f32 %v118_v47, %v117_v43  ;;  %v144_v52 = vadd.f32 %v143_v48, %v142_v44 }
  0x33   :  { %v114_v53 = vrot.slane %v113_v49, 1  ;;  %v139_v54 = vrot.slane %v138_v50, 1 }
  0x34   :  { %v120_v55 = vrot.slane %v119_v51, 1  ;;  %v145_v56 = vrot.slane %v144_v52, 1 }
  0x35   :  { %v115_v57 = vadd.f32 %v114_v53, %v113_v49  ;;  %v140_v59 = vadd.f32 %v139_v54, %v138_v50 }
  0x36   :  { %v121_v58 = vadd.f32 %v120_v55, %v119_v51  ;;  %v146_v60 = vadd.f32 %v145_v56, %v144_v52 }
  0x38   :  { %v124_v62 = vrot.slane %v121_v58, 7  ;;  %v149_v0 = vrot.slane %v146_v60, 7 }
  0x3a   :  { %v126_v2 = vsel %vm125_vm9, %v115_v57, %v124_v62  ;;  %v150_v3 = vsel %vm125_vm9, %v140_v59, %v149_v0 }
  0x3b   :  { %v128_v4 = vadd.f32 %v126_v2, %v109_v61  ;;  %v152_v5 = vadd.f32 %v150_v3, %v134_v63 }
  0x3d   :  { %133 = vst.msk [vmem:[#allocation2] sm:$0x3] %vm366_vm0, %v128_v4 }
  0x3e   :  { %153 = vst.msk [vmem:[#allocation3] sm:$0x3] %vm366_vm0, %v152_v5 }
  0x44   :  { %v157_v6 = vld [vmem:[#allocation2] sm:$0x3] }
  0x45   :  { %v159_v7 = vperm.slane %v157_v6, 0  ;;  %v160_v8 = vperm.slane %v157_v6, 1  ;;  %v170_v9 = vld [vmem:[#allocation3] sm:$0x3] }
  0x46   :  { %v172_v12 = vperm.slane %v170_v9, 0  ;;  %v173_v13 = vperm.slane %v170_v9, 1 }
  0x47   :  { %v163_v10 = vsel %vm125_vm9, %v159_v7, 0.0  ;;  %v164_v11 = vsel %vm125_vm9, %v160_v8, 0.0 }
  0x48   :  { %v165_v14 = vadd.f32 %v164_v11, %v163_v10  ;;  %v176_v15 = vsel %vm125_vm9, %v172_v12, 0.0  ;;  %v177_v16 = vsel %vm125_vm9, %v173_v13, 0.0 }
  0x49   :  { %v178_v17 = vadd.f32 %v177_v16, %v176_v15 }
  0x4a   :  { %166 = vadd.xlane.f32.xlu0 %v165_v14 }
  0x52   :  { %179 = vadd.xlane.f32.xlu0 %v178_v17 }
  0xbd   :  { %v167_v1 = vpop.xlane.xlu0 %166 }
  0xbe   :  { %169 = vst.msk [vmem:[#allocation9] sm:$0x1] %vm168_vm10, %v167_v1 }
  0xbf   :  { %192 = dma.vmem_to_hbm [thread:$0]  %s188_s1, 16, %s190_s24, [#allocation6]  }
  0xc5   :  { %v180_v18 = vpop.xlane.xlu0 %179 }
  0xc6   :  { %181 = vst.msk [vmem:[#allocation10] sm:$0x1] %vm168_vm10, %v180_v18 }
  0xc7   :  { %203 = dma.vmem_to_hbm [thread:$0]  %s199_s26, 16, %s201_s29, [#allocation11]  }
  0xc8   :  { %331 = dma.done.wait [#allocation6], 16  }
  0xc9   :  { %332 = vsyncadd [#allocation6], 4294967280 }
  0xca   :  { %333 = dma.done.wait [#allocation11], 16  }
  0xcb   :  { %334 = vsyncadd [#allocation11], 4294967280 }
  0xcc   :  { %212 = vsyncpa [#allocation5], 1 }
  0xcd   :  { %213 = vsyncpa [#allocation8], 1 }
  0xce   :  { %214 = vsyncpa [#allocation6], 1 }
  0xcf   :  { %215 = vsyncpa [#allocation11], 1 }

</bundles_post_ra>
